<compile_context>
chip_gen: v7x
topology: tpu7x:2x2x1
jax: 0.10.0
libtpu: 0.0.40
codegen_flags: <defaults>
</compile_context>

<pallas_src>
import jax
import jax.numpy as jnp
from jax import lax
from jax.experimental import pallas as pl
from jax.experimental.pallas import tpu as pltpu

GAMMA = 2.0


def _cdiv(a, b):
    return -(-a // b)


def _round_up(x, m):
    return ((x + m - 1) // m) * m


def _make_kernel(n_valid, tile_n, tiles_per_core, gamma):
    def kernel(x_ref, t_ref, out_ref):
        c = pl.program_id(0)   # core-split index ("parallel")
        i = pl.program_id(1)   # tile index within this core ("arbitrary")

        @pl.when(i == 0)
        def _():
            out_ref[...] = jnp.zeros_like(out_ref)

        x = x_ref[...].astype(jnp.float32)             # (TILE_N, C)
        t = t_ref[...]                                 # (TILE_N, 1) int32
        tn, cc = x.shape

        # Numerically stable log-sum-exp over the class axis.
        m = jnp.max(x, axis=-1, keepdims=True)         # (TILE_N, 1)
        z = x - m
        sumexp = jnp.sum(jnp.exp(z), axis=-1, keepdims=True)
        lse = jnp.log(sumexp)                          # (TILE_N, 1)

        # Gather the target-column logit with a single one-hot sweep.
        col = lax.broadcasted_iota(jnp.int32, (1, cc), 1)   # (1, C) -> broadcast
        onehot = col == t                                   # (TILE_N, C)
        z_t = jnp.sum(jnp.where(onehot, z, 0.0), axis=-1, keepdims=True)

        ce = lse - z_t                                 # per-sample CE, >= 0
        pt = jnp.exp(-ce)                              # tiny (TILE_N,1) EUP exps
        om = jnp.maximum(1.0 - pt, 0.0)                # clamp against rounding
        if gamma == 2.0:
            mod = om * om                              # 2 VPU muls, no pow
        elif gamma == 1.0:
            mod = om
        elif gamma == 0.0:
            mod = jnp.ones_like(om)
        else:
            mod = jnp.power(om, jnp.float32(gamma))
        focal = mod * ce                               # (TILE_N, 1)

        # Mask rows past the true batch size (ragged last tile, phantom tiles
        # of the megacore split).  jnp.where shields NaN/Inf in masked rows.
        tile_idx = c * tiles_per_core + i
        row = tile_idx * tile_n + lax.broadcasted_iota(jnp.int32, (tn, 1), 0)
        focal = jnp.where(row < n_valid, focal, 0.0)

        # Accumulate this tile's partial sum (scalar broadcast over the whole
        # (1,8,128) block; the wrapper reads one element per core-split).
        out_ref[...] = out_ref[...] + jnp.sum(focal)

    return kernel


def focal_loss(logits, targets, gamma=GAMMA, tile_n=None, num_core_splits=None):
    """logits: (N, C) f32/bf16, targets: (N,) int class indices -> scalar f32.

    Keep logits in bf16 from the producer if possible (halves HBM traffic);
    the kernel upcasts each tile to f32 internally.
    """
    n, c = logits.shape
    itemsize = jnp.dtype(logits.dtype).itemsize

    # Row tile: largest multiple of 8 whose lane-padded VMEM footprint stays
    # under an 8 MiB per-buffer budget (double-buffered by the pipeline),
    # capped at 8192 rows to amortize per-grid-step overhead on fast-HBM TPUs.
    c_phys = _round_up(max(c, 128), 128)               # lane-padded row width
    if tile_n is None:
        budget = 8 * 1024 * 1024
        tile_n = budget // (c_phys * itemsize)
        tile_n = max(8, min(8192, (tile_n // 8) * 8))
    tile_n = min(tile_n, _round_up(n, 8))
    assert tile_n % 8 == 0 and tile_n >= 8

    num_tiles = _cdiv(n, tile_n)
    if num_core_splits is None:
        num_core_splits = 2 if num_tiles >= 2 else 1   # v7x has 2 TCs; harmless on 1-TC chips
    tiles_per_core = _cdiv(num_tiles, num_core_splits)
    last_block = num_tiles - 1

    t = targets.reshape(n, 1).astype(jnp.int32)

    # Clamp phantom tile indices (odd split) into range; their rows are fully
    # masked inside the kernel so the duplicated read contributes nothing.
    def in_map(ci, ti):
        return (jnp.minimum(ci * tiles_per_core + ti, last_block), 0)

    kernel = _make_kernel(n, tile_n, tiles_per_core, float(gamma))

    cost = pl.CostEstimate(
        flops=8 * n * c,
        transcendentals=n * c + 2 * n,
        bytes_accessed=n * c * itemsize + n * 4 + num_core_splits * 8 * 128 * 4,
    )

    partials = pl.pallas_call(
        kernel,
        out_shape=jax.ShapeDtypeStruct((num_core_splits, 8, 128), jnp.float32),
        grid_spec=pltpu.PrefetchScalarGridSpec(
            num_scalar_prefetch=0,
            grid=(num_core_splits, tiles_per_core),
            in_specs=[
                pl.BlockSpec((tile_n, c), in_map),     # full (unpadded) C on lanes
                pl.BlockSpec((tile_n, 1), in_map),
            ],
            out_specs=pl.BlockSpec((1, 8, 128), lambda ci, ti: (ci, 0, 0)),
        ),
        compiler_params=pltpu.CompilerParams(
            dimension_semantics=("parallel", "arbitrary"),
            vmem_limit_bytes=32 * 1024 * 1024,
        ),
        cost_estimate=cost,
    )(logits, t)

    # reduction='mean': sum per-core partials, divide by the true batch size.
    return jnp.sum(partials[:, 0, 0]) / jnp.float32(n)


def focal_loss_ref(logits, targets, gamma=GAMMA):
    # Pure-JAX reference for sanity checking.
    logp = jax.nn.log_softmax(logits.astype(jnp.float32), axis=-1)
    ce = -jnp.take_along_axis(logp, targets[:, None].astype(jnp.int32), axis=-1)[:, 0]
    pt = jnp.exp(-ce)
    return jnp.mean((1.0 - pt) ** gamma * ce)


if __name__ == "__main__":
    key = jax.random.PRNGKey(0)
    k1, k2, k3, k4 = jax.random.split(key, 4)

    # Small shape matching the module's (N, C) logits / (N,) targets usage.
    N, C = 8, 32
    logits = jax.random.normal(k1, (N, C), dtype=jnp.float32) * 2.0
    targets = jax.random.randint(k2, (N,), 0, C, dtype=jnp.int32)

    loss = jax.block_until_ready(focal_loss(logits, targets))
    ref = jax.block_until_ready(focal_loss_ref(logits, targets))
    assert jnp.allclose(loss, ref, rtol=1e-5, atol=1e-5), (loss, ref)

    # Second check: N % tile_n != 0, C % 128 != 0, odd tile count -> exercises
    # the ragged last tile, the clamped phantom tile of the 2-way core split,
    # and the per-core accumulator init/merge path.
    N2, C2 = 100, 150
    logits2 = jax.random.normal(k3, (N2, C2), dtype=jnp.float32) * 3.0
    targets2 = jax.random.randint(k4, (N2,), 0, C2, dtype=jnp.int32)
    loss2 = jax.block_until_ready(focal_loss(logits2, targets2, tile_n=40))
    ref2 = jax.block_until_ready(focal_loss_ref(logits2, targets2))
    assert jnp.allclose(loss2, ref2, rtol=1e-5, atol=1e-5), (loss2, ref2)

    print("KERNEL_OK")
</pallas_src>

<mosaic_0001>
module attributes {stable_mosaic.version = 11 : i64} {
  func.func @kernel(%arg0: i32, %arg1: i32, %arg2: memref<8x32xf32, #tpu.memory_space<vmem>>, %arg3: memref<8x1xi32, #tpu.memory_space<vmem>>, %arg4: memref<1x8x128xf32, #tpu.memory_space<vmem>>) attributes {dimension_semantics = [#tpu.dimension_semantics<parallel>, #tpu.dimension_semantics<arbitrary>], iteration_bounds = array<i64: 1, 1>, scalar_prefetch = 0 : i64, scratch_operands = 0 : i64, tpu.core_type = #tpu.core_type<tc>, window_params = [{transform_indices = @transform_0, window_bounds = array<i64: 8, 32>}, {transform_indices = @transform_1, window_bounds = array<i64: 8, 1>}, {transform_indices = @transform_2, window_bounds = array<i64: 1, 8, 128>}]} {
    %c0_i32 = arith.constant 0 : i32
    %0 = arith.cmpi eq, %arg1, %c0_i32 : i32
    %1 = arith.extui %0 : i1 to i32
    %c0_i32_0 = arith.constant 0 : i32
    %2 = arith.cmpi ne, %1, %c0_i32_0 : i32
    scf.if %2 {
      %cst_19 = arith.constant 0.000000e+00 : f32
      %49 = vector.broadcast %cst_19 : f32 to vector<1x8x128xf32>
      %c0_20 = arith.constant 0 : index
      %c0_21 = arith.constant 0 : index
      %c0_22 = arith.constant 0 : index
      %50 = vector.load %arg4[%c0_20, %c0_21, %c0_22] : memref<1x8x128xf32, #tpu.memory_space<vmem>>, vector<1x8x128xf32>
      tpu.vector_store %arg4[%c0_20, %c0_21, %c0_22], %49 {strides = array<i32>} : memref<1x8x128xf32, #tpu.memory_space<vmem>>, vector<1x8x128xf32>,
    } else {
    }
    %c0 = arith.constant 0 : index
    %c0_1 = arith.constant 0 : index
    %3 = vector.load %arg2[%c0, %c0_1] : memref<8x32xf32, #tpu.memory_space<vmem>>, vector<8x32xf32>
    %c0_2 = arith.constant 0 : index
    %c0_3 = arith.constant 0 : index
    %4 = vector.load %arg3[%c0_2, %c0_3] : memref<8x1xi32, #tpu.memory_space<vmem>>, vector<8x1xi32>
    %cst = arith.constant dense<0xFF800000> : vector<8xf32>
    %5 = vector.multi_reduction <maximumf>, %3, %cst [1] : vector<8x32xf32> to vector<8xf32>
    %6 = vector.shape_cast %5 : vector<8xf32> to vector<8x1xf32>
    %7 = vector.broadcast %6 : vector<8x1xf32> to vector<8x32xf32>
    %8 = arith.subf %3, %7 : vector<8x32xf32>
    %9 = math.exp %8 : vector<8x32xf32>
    %cst_4 = arith.constant dense<0.000000e+00> : vector<8xf32>
    %10 = vector.multi_reduction <add>, %9, %cst_4 [1] : vector<8x32xf32> to vector<8xf32>
    %11 = vector.shape_cast %10 : vector<8xf32> to vector<8x1xf32>
    %12 = math.log %11 : vector<8x1xf32>
    %13 = tpu.iota {dimensions = array<i32: 1>} : vector<1x32xi32>
    %14 = vector.broadcast %13 : vector<1x32xi32> to vector<8x32xi32>
    %15 = vector.broadcast %4 : vector<8x1xi32> to vector<8x32xi32>
    %16 = arith.cmpi eq, %14, %15 : vector<8x32xi32>
    %cst_5 = arith.constant 0.000000e+00 : f32
    %17 = vector.broadcast %cst_5 : f32 to vector<8x32xf32>
    %18 = arith.select %16, %8, %17 : vector<8x32xi1>, vector<8x32xf32>
    %cst_6 = arith.constant dense<0.000000e+00> : vector<8xf32>
    %19 = vector.multi_reduction <add>, %18, %cst_6 [1] : vector<8x32xf32> to vector<8xf32>
    %20 = vector.shape_cast %19 : vector<8xf32> to vector<8x1xf32>
    %21 = arith.subf %12, %20 : vector<8x1xf32>
    %cst_7 = arith.constant 0.000000e+00 : f32
    %22 = vector.broadcast %cst_7 : f32 to vector<8x1xf32>
    %23 = arith.subf %22, %21 : vector<8x1xf32>
    %24 = math.exp %23 : vector<8x1xf32>
    %cst_8 = arith.constant 1.000000e+00 : f32
    %25 = vector.broadcast %cst_8 : f32 to vector<8x1xf32>
    %26 = arith.subf %25, %24 : vector<8x1xf32>
    %cst_9 = arith.constant 0.000000e+00 : f32
    %27 = vector.broadcast %cst_9 : f32 to vector<8x1xf32>
    %28 = arith.maximumf %26, %27 : vector<8x1xf32>
    %29 = arith.mulf %28, %28 : vector<8x1xf32>
    %30 = arith.mulf %29, %21 : vector<8x1xf32>
    %c1_i32 = arith.constant 1 : i32
    %31 = arith.muli %arg0, %c1_i32 : i32
    %32 = arith.addi %31, %arg1 : i32
    %c8_i32 = arith.constant 8 : i32
    %33 = arith.muli %32, %c8_i32 : i32
    %34 = tpu.iota {dimensions = array<i32: 0>} : vector<8x1xi32>
    %35 = vector.broadcast %33 : i32 to vector<8x1xi32>
    %36 = arith.addi %35, %34 : vector<8x1xi32>
    %c8_i32_10 = arith.constant 8 : i32
    %37 = vector.broadcast %c8_i32_10 : i32 to vector<8x1xi32>
    %38 = arith.cmpi slt, %36, %37 : vector<8x1xi32>
    %cst_11 = arith.constant 0.000000e+00 : f32
    %39 = vector.broadcast %cst_11 : f32 to vector<8x1xf32>
    %40 = arith.select %38, %30, %39 : vector<8x1xi1>, vector<8x1xf32>
    %c0_12 = arith.constant 0 : index
    %c0_13 = arith.constant 0 : index
    %c0_14 = arith.constant 0 : index
    %41 = vector.load %arg4[%c0_12, %c0_13, %c0_14] : memref<1x8x128xf32, #tpu.memory_space<vmem>>, vector<1x8x128xf32>
    %42 = vector.shape_cast %40 : vector<8x1xf32> to vector<1x8x1xf32>
    %cst_15 = arith.constant dense<0.000000e+00> : vector<1xf32>
    %43 = vector.multi_reduction <add>, %42, %cst_15 [1, 2] : vector<1x8x1xf32> to vector<1xf32>
    %44 = vector.shape_cast %43 : vector<1xf32> to vector<1x1x1xf32>
    %45 = vector.extract %44[0, 0, 0] : f32 from vector<1x1x1xf32>
    %46 = vector.broadcast %45 : f32 to vector<1x8x128xf32>
    %47 = arith.addf %41, %46 : vector<1x8x128xf32>
    %c0_16 = arith.constant 0 : index
    %c0_17 = arith.constant 0 : index
    %c0_18 = arith.constant 0 : index
    %48 = vector.load %arg4[%c0_16, %c0_17, %c0_18] : memref<1x8x128xf32, #tpu.memory_space<vmem>>, vector<1x8x128xf32>
    tpu.vector_store %arg4[%c0_16, %c0_17, %c0_18], %47 {strides = array<i32>} : memref<1x8x128xf32, #tpu.memory_space<vmem>>, vector<1x8x128xf32>,
    return
  }
  func.func @transform_0(%arg0: i32, %arg1: i32) -> (i32, i32) {
    %c1_i32 = arith.constant 1 : i32
    %0 = arith.muli %arg0, %c1_i32 : i32
    %1 = arith.addi %0, %arg1 : i32
    %c0_i32 = arith.constant 0 : i32
    %2 = arith.minsi %1, %c0_i32 : i32
    %c0_i32_0 = arith.constant 0 : i32
    %c0_i32_1 = arith.constant 0 : i32
    return %2, %c0_i32_0 : i32, i32
  }
  func.func @transform_1(%arg0: i32, %arg1: i32) -> (i32, i32) {
    %c1_i32 = arith.constant 1 : i32
    %0 = arith.muli %arg0, %c1_i32 : i32
    %1 = arith.addi %0, %arg1 : i32
    %c0_i32 = arith.constant 0 : i32
    %2 = arith.minsi %1, %c0_i32 : i32
    %c0_i32_0 = arith.constant 0 : i32
    %c0_i32_1 = arith.constant 0 : i32
    return %2, %c0_i32_0 : i32, i32
  }
  func.func @transform_2(%arg0: i32, %arg1: i32) -> (i32, i32, i32) {
    %c0_i32 = arith.constant 0 : i32
    %c0_i32_0 = arith.constant 0 : i32
    %c0_i32_1 = arith.constant 0 : i32
    return %arg0, %c0_i32, %c0_i32_0 : i32, i32, i32
  }
}

</mosaic_0001>

<bundles_post_ra>
// kernel: tpu_custom_call.1
= control target key start
LH: loop header
LB: loop body
LE: loop exit
PB: predicated region body
PF: predicated region fallthrough
CT: control target
= control target key end

     0   :  { %vm73_vm0 = vcmask 261120   ;;  %s226_s0 = inlined_call_operand.vmem [shape: f32[8,32], index: 0, kind: input, shape index: {}]   ;;  %s227_s1 = inlined_call_operand.vmem [shape: s32[8,1], index: 1, kind: input, shape index: {}]   ;;  %s228_s2 = inlined_call_operand.hbm [shape: f32[1,8,128], index: 2, kind: output, shape index: {}]  }
   0x1   :  { %v71_v0 = vld [vmem:[%s226_s0] sm:$0xff] }
   0x2   :  { %7 = vsyncpa [#allocation3], 0  ;;  %v74_v1 = vsel %vm73_vm0, %v71_v0, -inf  ;;  %v188_v2 = vmov 0   ;;  %v72_v3 = vld [vmem:[%s227_s1] sm:$0xff]  ;;  %v85_v7 = vlaneseq  ;;  %vm112_vm2 = vcmask 7168  }
   0x3   :  { %157 = vset.pattern.permute.xlu0 %v188_v2  ;;  %s189_s0 = smov [#allocation2]  }
   0x4   :  { %75 = vmax.xlane.f32.xlu0 %v74_v1  ;;  %v86_v8 = vand.u32 127, %v85_v7  ;;  %s132_s1 = sshll.u32 %s189_s0, 4  ;;  %s133_s1 = int_to_ptr.vmem [resolvable:$true] %s132_s1 }
   0x5   :  { %s164_s14 = scalar_lea.vmem %s133_s1, 128  ;;  %p169_p1 = scmp.lt.s32.totalorder %s133_s1, %s133_s1 }
   0x6   :  { %p165_p0 = scmp.ne.s32.totalorder %s133_s1, %s164_s14  ;;  %p170_p2 = scmp.lt.s32.totalorder %s164_s14, %s164_s14 }
   0x8   :  { %p171_p3 = por %p170_p2, %p169_p1 }
   0xa   :  { %p172_p4 = pnand %p171_p3, %p165_p0 }
  0x1a   :  { %88 = vperm.xlu0 %157, %v72_v3  }
  0x91   :  { %v76_v4 = vpop.xlane.xlu0 %75 }
  0x92   :  { %v77_v5 = vsub.f32 %v71_v0, %v76_v4 }
  0x94   :  { %v78_v6 = vmul.f32 1.442695, %v77_v5 }
  0x96   :  { %158 = vpow2.f32 %v78_v6 }
  0x99   :  { %v89_v9 = vpop.permute.xlu0 %88 }
  0x9a   :  { %vm90_vm1 = vcmp.eq.s32.totalorder %v86_v8, %v89_v9 }
  0x9b   :  { %v91_v12 = vsel %vm90_vm1, %v77_v5, 0.0 }
  0x9c   :  { %v92_v13 = vsel %vm73_vm0, %v91_v12, 0.0 }
  0xa0   :  { %v159_v10 = vpop.eup %158 }
  0xa1   :  { %v80_v11 = vsel %vm73_vm0, %v159_v10, 0.0 }
  0xa2   :  { %81 = vadd.xlane.f32.xlu1 %v80_v11 }
  0xa6   :  { %93 = vadd.xlane.f32.xlu1 %v92_v13 }
 0x12f   :  { %v82_v14 = vpop.xlane.xlu1 %81 }
 0x130   :  { %160 = vlog2.f32 %v82_v14 }
 0x133   :  { %v94_v17 = vpop.xlane.xlu1 %93 }
 0x13a   :  { %v161_v15 = vpop.eup %160 }
 0x13b   :  { %v84_v16 = vmul.f32 0.6931472, %v161_v15 }
 0x13d   :  { %v95_v18 = vsub.f32 %v84_v16, %v94_v17 }
 0x13f   :  { %v96_v19 = vsub.f32 0.0, %v95_v18 }
 0x141   :  { %v97_v20 = vmul.f32 1.442695, %v96_v19 }
 0x143   :  { %162 = vpow2.f32 %v97_v20 }
 0x14d   :  { %v163_v21 = vpop.eup %162 }
 0x14e   :  { %v99_v22 = vsub.f32 1.0, %v163_v21 }
 0x150   :  { %v100_v23 = vmax.f32 %v99_v22, 0.0 }
 0x152   :  { %v101_v24 = vmul.f32 %v100_v23, %v100_v23 }
 0x154   :  { %v102_v25 = vmul.f32 %v101_v24, %v95_v18 }
 0x156   :  { %v113_v26 = vsel %vm112_vm2, %v102_v25, 0.0 }
 0x157   :  { %114 = vadd.xlane.f32.xlu1 %v113_v26 }
 0x1e4   :  { %v115_v27 = vpop.xlane.xlu1 %114 }
 0x1e5   :  { %v116_v28 = vrot.slane %v115_v27, 4 }
 0x1e7   :  { %v117_v29 = vadd.f32 %v116_v28, %v115_v27 }
 0x1e9   :  { %v118_v30 = vrot.slane %v117_v29, 2 }
 0x1eb   :  { %v119_v31 = vadd.f32 %v118_v30, %v117_v29 }
 0x1ed   :  { %v120_v32 = vrot.slane %v119_v31, 1 }
 0x1ef   :  { %v121_v33 = vadd.f32 %v120_v32, %v119_v31 }
 0x1f1   :  { %152 = vpush %v121_v33 }
 0x222   :  { %s153_s13 = spop %152 }
 0x223   :  { %v123_v34 = vstv %s153_s13 }
 0x224   :  { %125 = vst [vmem:[#allocation2] sm:$0xff] %v123_v34 }
 0x225   :  { %175 = shalt.err (!%p172_p4)
}
 0x226   :  { %s176_s17 = scalar_lea.hbm %s228_s2, 128 }
 0x227   :  { %p177_p5 = scmp.ne.s32.totalorder %s228_s2, %s176_s17  ;;  %p180_p6 = scmp.lt.u32.totalorder %s176_s17, %s228_s2 }
 0x229   :  { %p182_p7 = pnand %p180_p6, %p177_p5 }
 0x22b   :  { %185 = shalt.err (!%p182_p7)
}
 0x22c   :  { %135 = dma.vmem_to_hbm [thread:$0]  %s133_s1, 128, %s228_s2, [#allocation3]  }
 0x22d   :  { %186 = dma.done.wait [#allocation3], 128  }
 0x22e   :  { %187 = vsyncadd [#allocation3], 4294967168 }
 0x22f   :  { %139 = vsyncpa [#allocation3], 1 }

</bundles_post_ra>
